<compile_context>
chip_gen: v6e
topology: v6e:2x2x1
jax: 0.10.0
libtpu: 0.0.40
codegen_flags: <defaults>
</compile_context>

<pallas_src>
import functools

import jax
import jax.numpy as jnp
from jax.experimental import pallas as pl
from jax.experimental.pallas import tpu as pltpu

_NEG_BIG = -1.0e30      # padded-class bias: never wins the max; exp underflows to 0 in f32
_LANE = 128
_SUBLANE = 8
_VMEM_BUDGET = 28 << 20  # cap on the double-buffered working set (fits v5e/v6e/v7x)


def _round_up(n: int, m: int) -> int:
    return ((n + m - 1) // m) * m


def _working_set_bytes(tb: int, K: int, C_pad: int) -> int:
    # double-buffered x tile + double-buffered out tile + W + bias (counted
    # double-buffered conservatively; their constant index_map means they are
    # only fetched once).  All f32.
    return 4 * (2 * tb * K + 2 * tb * C_pad + 2 * K * C_pad + 2 * C_pad)


def filter_net_kernel(x_ref, w_ref, b_ref, o_ref):
    # f32 MXU matmul with f32 accumulation (faithful to the PyTorch Linear;
    # the kernel is HBM-bound so the extra MXU passes are hidden).
    logits = jnp.dot(x_ref[...], w_ref[...], preferred_element_type=jnp.float32)
    logits = logits + b_ref[...]                       # (1, C_pad) broadcast over rows
    # Numerically stable row-wise log-softmax, entirely in f32.
    m = jnp.max(logits, axis=-1, keepdims=True)
    shifted = logits - m
    lse = jnp.log(jnp.sum(jnp.exp(shifted), axis=-1, keepdims=True))
    o_ref[...] = (shifted - lse).astype(o_ref.dtype)


@functools.partial(jax.jit, static_argnames=("tile_b",))
def filter_net_forward(x, w, b, *, tile_b: int = 2048):
    """x: (B, 1024) f32, w: (1024, C) f32 (== W_torch.T), b: (C,) f32.

    Returns (B, C) f32 log-probabilities.
    """
    B, K = x.shape
    C = w.shape[1]

    # ---- pad the class dim to a lane-dense width ---------------------------
    # (multiple of 256 once C exceeds 128, to fill the v6e/v7x 256-wide MXU)
    C_pad = _round_up(C, 256) if C > _LANE else _LANE
    w_pad = jnp.zeros((K, C_pad), jnp.float32).at[:, :C].set(w.astype(jnp.float32))
    b_pad = jnp.full((1, C_pad), _NEG_BIG, jnp.float32).at[0, :C].set(
        b.astype(jnp.float32))

    # ---- batch tile: no wrapper padding, cdiv grid with partial last block --
    if B <= tile_b:
        tb = B                                     # one block covers the full batch dim
    else:
        # keep >= 2 grid steps so the "parallel" axis shards across both v7x TCs
        tb = min(tile_b, _round_up(pl.cdiv(B, 2), _SUBLANE))
    # shrink the tile until the double-buffered working set fits the VMEM budget
    while tb >= 16 and _working_set_bytes(tb, K, C_pad) > _VMEM_BUDGET:
        tb = _round_up(tb // 2, _SUBLANE)

    grid = (pl.cdiv(B, tb),)
    vmem_limit = min(_working_set_bytes(tb, K, C_pad) + (4 << 20), 32 << 20)

    cost = pl.CostEstimate(
        flops=2 * B * K * C_pad,
        transcendentals=B * C_pad,                 # exp (+ one log per row)
        bytes_accessed=4 * (B * K + K * C_pad + C_pad + B * C_pad),
    )

    out = pl.pallas_call(
        filter_net_kernel,
        out_shape=jax.ShapeDtypeStruct((B, C_pad), jnp.float32),
        grid=grid,
        in_specs=[
            pl.BlockSpec((tb, K), lambda i: (i, 0)),      # x tile, pipelined over B
            pl.BlockSpec((K, C_pad), lambda i: (0, 0)),   # W: VMEM-resident across iters
            pl.BlockSpec((1, C_pad), lambda i: (0, 0)),   # bias: VMEM-resident
        ],
        out_specs=pl.BlockSpec((tb, C_pad), lambda i: (i, 0)),
        compiler_params=pltpu.CompilerParams(
            dimension_semantics=("parallel",),            # rows independent
            vmem_limit_bytes=vmem_limit,                  # right-sized per generation
        ),
        cost_estimate=cost,
    )(x.astype(jnp.float32), w_pad, b_pad)

    # Lane slice back to the real class count (kept outside the kernel so the
    # kernel's stores stay lane-dense; fuses into the consumer under jit).
    return out[:, :C]


if __name__ == "__main__":
    # Small, deterministic setup consistent with the module:
    #   in_features is fixed at 1024 by the module; num_category = 40
    #   (ModelNet40-style) and a small batch.
    B, K, C = 8, 1024, 40
    key = jax.random.PRNGKey(0)
    kx, kw, kb = jax.random.split(key, 3)

    x = jax.random.normal(kx, (B, K), dtype=jnp.float32)
    # Deterministic "init": W stored as (K, C) == W_torch.T
    w = jax.random.normal(kw, (K, C), dtype=jnp.float32) * 0.02
    b = jax.random.normal(kb, (C,), dtype=jnp.float32) * 0.01

    out = filter_net_forward(x, w, b)
    out = jax.block_until_ready(out)

    # Pure-JAX f32 reference (same math as the PyTorch module's forward).
    ref = jax.nn.log_softmax(x @ w + b, axis=-1)

    assert out.shape == (B, C)
    max_err = float(jnp.max(jnp.abs(out - ref)))
    assert jnp.allclose(out, ref, atol=1e-2, rtol=1e-2), max_err

    print("KERNEL_OK")
</pallas_src>

<mosaic_0001>
module attributes {stable_mosaic.version = 11 : i64} {
  func.func @filter_net_kernel(%arg0: i32, %arg1: memref<8x1024xf32, #tpu.memory_space<vmem>>, %arg2: memref<1024x128xf32, #tpu.memory_space<vmem>>, %arg3: memref<1x128xf32, #tpu.memory_space<vmem>>, %arg4: memref<8x128xf32, #tpu.memory_space<vmem>>) attributes {dimension_semantics = [#tpu.dimension_semantics<parallel>], iteration_bounds = array<i64: 1>, scalar_prefetch = 0 : i64, scratch_operands = 0 : i64, tpu.core_type = #tpu.core_type<tc>, window_params = [{transform_indices = @transform_0, window_bounds = array<i64: 8, 1024>}, {pipeline_mode = #tpu.pipeline_mode<synchronous>, transform_indices = @transform_1, window_bounds = array<i64: 1024, 128>}, {pipeline_mode = #tpu.pipeline_mode<synchronous>, transform_indices = @transform_2, window_bounds = array<i64: 1, 128>}, {transform_indices = @transform_3, window_bounds = array<i64: 8, 128>}]} {
    %c0 = arith.constant 0 : index
    %c0_0 = arith.constant 0 : index
    %0 = vector.load %arg1[%c0, %c0_0] : memref<8x1024xf32, #tpu.memory_space<vmem>>, vector<8x1024xf32>
    %c0_1 = arith.constant 0 : index
    %c0_2 = arith.constant 0 : index
    %1 = vector.load %arg2[%c0_1, %c0_2] : memref<1024x128xf32, #tpu.memory_space<vmem>>, vector<1024x128xf32>
    %cst = arith.constant dense<0.000000e+00> : vector<8x128xf32>
    %2 = tpu.matmul %0, %1, %cst {dimension_numbers = #tpu.dot_dimension_numbers<[1], [0], [0], [1], [0, 0, 1, 1], [], []>} : vector<8x1024xf32>, vector<1024x128xf32>, vector<8x128xf32> -> vector<8x128xf32>
    %c0_3 = arith.constant 0 : index
    %c0_4 = arith.constant 0 : index
    %3 = vector.load %arg3[%c0_3, %c0_4] : memref<1x128xf32, #tpu.memory_space<vmem>>, vector<1x128xf32>
    %4 = vector.broadcast %3 : vector<1x128xf32> to vector<8x128xf32>
    %5 = arith.addf %2, %4 : vector<8x128xf32>
    %cst_5 = arith.constant dense<0xFF800000> : vector<8xf32>
    %6 = vector.multi_reduction <maximumf>, %5, %cst_5 [1] : vector<8x128xf32> to vector<8xf32>
    %7 = vector.shape_cast %6 : vector<8xf32> to vector<8x1xf32>
    %8 = vector.broadcast %7 : vector<8x1xf32> to vector<8x128xf32>
    %9 = arith.subf %5, %8 : vector<8x128xf32>
    %10 = math.exp %9 : vector<8x128xf32>
    %cst_6 = arith.constant dense<0.000000e+00> : vector<8xf32>
    %11 = vector.multi_reduction <add>, %10, %cst_6 [1] : vector<8x128xf32> to vector<8xf32>
    %12 = vector.shape_cast %11 : vector<8xf32> to vector<8x1xf32>
    %13 = math.log %12 : vector<8x1xf32>
    %14 = vector.broadcast %13 : vector<8x1xf32> to vector<8x128xf32>
    %15 = arith.subf %9, %14 : vector<8x128xf32>
    %c0_7 = arith.constant 0 : index
    %c0_8 = arith.constant 0 : index
    %16 = vector.load %arg4[%c0_7, %c0_8] : memref<8x128xf32, #tpu.memory_space<vmem>>, vector<8x128xf32>
    tpu.vector_store %arg4[%c0_7, %c0_8], %15 {strides = array<i32>} : memref<8x128xf32, #tpu.memory_space<vmem>>, vector<8x128xf32>,
    return
  }
  func.func @transform_0(%arg0: i32) -> (i32, i32) {
    %c0_i32 = arith.constant 0 : i32
    %c0_i32_0 = arith.constant 0 : i32
    return %arg0, %c0_i32 : i32, i32
  }
  func.func @transform_1(%arg0: i32) -> (i32, i32) {
    %c0_i32 = arith.constant 0 : i32
    %c0_i32_0 = arith.constant 0 : i32
    %c0_i32_1 = arith.constant 0 : i32
    return %c0_i32, %c0_i32_0 : i32, i32
  }
  func.func @transform_2(%arg0: i32) -> (i32, i32) {
    %c0_i32 = arith.constant 0 : i32
    %c0_i32_0 = arith.constant 0 : i32
    %c0_i32_1 = arith.constant 0 : i32
    return %c0_i32, %c0_i32_0 : i32, i32
  }
  func.func @transform_3(%arg0: i32) -> (i32, i32) {
    %c0_i32 = arith.constant 0 : i32
    %c0_i32_0 = arith.constant 0 : i32
    return %arg0, %c0_i32 : i32, i32
  }
}

</mosaic_0001>

<bundles_post_ra>
// kernel: filter_net_forward.1
= control target key start
LH: loop header
LB: loop body
LE: loop exit
PB: predicated region body
PF: predicated region fallthrough
CT: control target
= control target key end

     0   :  { %s1066_s0 = inlined_call_operand.vmem [shape: f32[8,1024], index: 0, kind: input, shape index: {}]   ;;  %s1067_s1 = inlined_call_operand.vmem [shape: f32[1024,128], index: 1, kind: input, shape index: {}]   ;;  %s1068_s2 = inlined_call_operand.vmem [shape: f32[1,128], index: 2, kind: input, shape index: {}]   ;;  %s1069_s3 = inlined_call_operand.hbm [shape: f32[8,128], index: 3, kind: output, shape index: {}]  }
   0x1   :  { %v54_v0 = vld [vmem:[%s1067_s1 + $0xf8] sm:$0xff]  ;;  %v53_v4 = vld [vmem:[%s1067_s1 + $0xf0] sm:$0xff]  ;;  %v52_v8 = vld [vmem:[%s1067_s1 + $0xe8] sm:$0xff] }
   0x2   :  { %v86_v1 = vld [vmem:[%s1067_s1 + $0x1f8] sm:$0xff]  ;;  %464 = vmatprep.subr.mxu0 %v54_v0  ;;  %v85_v5 = vld [vmem:[%s1067_s1 + $0x1f0] sm:$0xff]  ;;  %v84_v9 = vld [vmem:[%s1067_s1 + $0x1e8] sm:$0xff] }
   0x3   :  { %v38_v2 = vld [vmem:[%s1067_s1 + $0x78] sm:$0xff]  ;;  %499 = vmatprep.subr.mxu1 %v86_v1  ;;  %v37_v6 = vld [vmem:[%s1067_s1 + $0x70] sm:$0xff]  ;;  %v36_v10 = vld [vmem:[%s1067_s1 + $0x68] sm:$0xff] }
   0x4   :  { %v70_v3 = vld [vmem:[%s1067_s1 + $0x178] sm:$0xff]  ;;  %465 = vmatpush3.msra.mxu0 %v38_v2  ;;  %v69_v7 = vld [vmem:[%s1067_s1 + $0x170] sm:$0xff]  ;;  %v68_v11 = vld [vmem:[%s1067_s1 + $0x168] sm:$0xff] }
   0x5   :  { %500 = vmatpush3.msra.mxu1 %v70_v3  ;;  %466 = vmatprep.subr.mxu0 %v53_v4  ;;  %v51_v12 = vld [vmem:[%s1067_s1 + $0xe0] sm:$0xff]  ;;  %v50_v16 = vld [vmem:[%s1067_s1 + $0xd8] sm:$0xff]  ;;  %v49_v20 = vld [vmem:[%s1067_s1 + $0xd0] sm:$0xff] }
   0x6   :  { %501 = vmatprep.subr.mxu1 %v85_v5  ;;  %467 = vmatpush3.msra.mxu0 %v37_v6  ;;  %v83_v13 = vld [vmem:[%s1067_s1 + $0x1e0] sm:$0xff]  ;;  %v82_v17 = vld [vmem:[%s1067_s1 + $0x1d8] sm:$0xff]  ;;  %v81_v21 = vld [vmem:[%s1067_s1 + $0x1d0] sm:$0xff] }
   0x7   :  { %502 = vmatpush3.msra.mxu1 %v69_v7  ;;  %468 = vmatprep.subr.mxu0 %v52_v8  ;;  %v35_v14 = vld [vmem:[%s1067_s1 + $0x60] sm:$0xff]  ;;  %v34_v18 = vld [vmem:[%s1067_s1 + $0x58] sm:$0xff]  ;;  %v33_v22 = vld [vmem:[%s1067_s1 + $0x50] sm:$0xff] }
   0x8   :  { %503 = vmatprep.subr.mxu1 %v84_v9  ;;  %v67_v15 = vld [vmem:[%s1067_s1 + $0x160] sm:$0xff]  ;;  %469 = vmatpush3.msra.mxu0 %v36_v10  ;;  %v66_v19 = vld [vmem:[%s1067_s1 + $0x158] sm:$0xff]  ;;  %v65_v23 = vld [vmem:[%s1067_s1 + $0x150] sm:$0xff] }
   0x9   :  { %504 = vmatpush3.msra.mxu1 %v68_v11  ;;  %470 = vmatprep.subr.mxu0 %v51_v12  ;;  %v48_v24 = vld [vmem:[%s1067_s1 + $0xc8] sm:$0xff]  ;;  %v47_v28 = vld [vmem:[%s1067_s1 + $0xc0] sm:$0xff]  ;;  %v46_v32 = vld [vmem:[%s1067_s1 + $0xb8] sm:$0xff] }
   0xa   :  { %505 = vmatprep.subr.mxu1 %v83_v13  ;;  %471 = vmatpush3.msra.mxu0 %v35_v14  ;;  %v80_v25 = vld [vmem:[%s1067_s1 + $0x1c8] sm:$0xff]  ;;  %v79_v29 = vld [vmem:[%s1067_s1 + $0x1c0] sm:$0xff]  ;;  %v78_v33 = vld [vmem:[%s1067_s1 + $0x1b8] sm:$0xff] }
   0xb   :  { %506 = vmatpush3.msra.mxu1 %v67_v15  ;;  %472 = vmatprep.subr.mxu0 %v50_v16  ;;  %v32_v26 = vld [vmem:[%s1067_s1 + $0x48] sm:$0xff]  ;;  %v31_v30 = vld [vmem:[%s1067_s1 + $0x40] sm:$0xff]  ;;  %v30_v34 = vld [vmem:[%s1067_s1 + $0x38] sm:$0xff] }
   0xc   :  { %507 = vmatprep.subr.mxu1 %v82_v17  ;;  %473 = vmatpush3.msra.mxu0 %v34_v18  ;;  %v64_v27 = vld [vmem:[%s1067_s1 + $0x148] sm:$0xff]  ;;  %v63_v31 = vld [vmem:[%s1067_s1 + $0x140] sm:$0xff]  ;;  %v62_v35 = vld [vmem:[%s1067_s1 + $0x138] sm:$0xff] }
   0xd   :  { %508 = vmatpush3.msra.mxu1 %v66_v19  ;;  %474 = vmatprep.subr.mxu0 %v49_v20  ;;  %v45_v36 = vld [vmem:[%s1067_s1 + $0xb0] sm:$0xff]  ;;  %v44_v40 = vld [vmem:[%s1067_s1 + $0xa8] sm:$0xff]  ;;  %v43_v44 = vld [vmem:[%s1067_s1 + $0xa0] sm:$0xff] }
   0xe   :  { %509 = vmatprep.subr.mxu1 %v81_v21  ;;  %475 = vmatpush3.msra.mxu0 %v33_v22  ;;  %v77_v37 = vld [vmem:[%s1067_s1 + $0x1b0] sm:$0xff]  ;;  %v76_v41 = vld [vmem:[%s1067_s1 + $0x1a8] sm:$0xff]  ;;  %v75_v45 = vld [vmem:[%s1067_s1 + $0x1a0] sm:$0xff] }
   0xf   :  { %510 = vmatpush3.msra.mxu1 %v65_v23  ;;  %476 = vmatprep.subr.mxu0 %v48_v24  ;;  %v29_v38 = vld [vmem:[%s1067_s1 + $0x30] sm:$0xff]  ;;  %v28_v42 = vld [vmem:[%s1067_s1 + $0x28] sm:$0xff]  ;;  %v27_v46 = vld [vmem:[%s1067_s1 + $0x20] sm:$0xff] }
  0x10   :  { %511 = vmatprep.subr.mxu1 %v80_v25  ;;  %477 = vmatpush3.msra.mxu0 %v32_v26  ;;  %v61_v39 = vld [vmem:[%s1067_s1 + $0x130] sm:$0xff]  ;;  %v60_v43 = vld [vmem:[%s1067_s1 + $0x128] sm:$0xff]  ;;  %v59_v47 = vld [vmem:[%s1067_s1 + $0x120] sm:$0xff] }
  0x11   :  { %512 = vmatpush3.msra.mxu1 %v64_v27  ;;  %478 = vmatprep.subr.mxu0 %v47_v28  ;;  %v42_v48 = vld [vmem:[%s1067_s1 + $0x98] sm:$0xff]  ;;  %v41_v52 = vld [vmem:[%s1067_s1 + $0x90] sm:$0xff]  ;;  %v40_v56 = vld [vmem:[%s1067_s1 + $0x88] sm:$0xff] }
  0x12   :  { %513 = vmatprep.subr.mxu1 %v79_v29  ;;  %479 = vmatpush3.msra.mxu0 %v31_v30  ;;  %v74_v49 = vld [vmem:[%s1067_s1 + $0x198] sm:$0xff]  ;;  %v73_v53 = vld [vmem:[%s1067_s1 + $0x190] sm:$0xff]  ;;  %v72_v57 = vld [vmem:[%s1067_s1 + $0x188] sm:$0xff] }
  0x13   :  { %514 = vmatpush3.msra.mxu1 %v63_v31  ;;  %480 = vmatprep.subr.mxu0 %v46_v32  ;;  %v26_v50 = vld [vmem:[%s1067_s1 + $0x18] sm:$0xff]  ;;  %v25_v54 = vld [vmem:[%s1067_s1 + $0x10] sm:$0xff]  ;;  %v24_v58 = vld [vmem:[%s1067_s1 + $0x8] sm:$0xff] }
  0x14   :  { %515 = vmatprep.subr.mxu1 %v78_v33  ;;  %481 = vmatpush3.msra.mxu0 %v30_v34  ;;  %v58_v51 = vld [vmem:[%s1067_s1 + $0x118] sm:$0xff]  ;;  %v57_v55 = vld [vmem:[%s1067_s1 + $0x110] sm:$0xff]  ;;  %v56_v59 = vld [vmem:[%s1067_s1 + $0x108] sm:$0xff] }
  0x15   :  { %516 = vmatpush3.msra.mxu1 %v62_v35  ;;  %482 = vmatprep.subr.mxu0 %v45_v36  ;;  %v39_v60 = vld [vmem:[%s1067_s1 + $0x80] sm:$0xff]  ;;  %v16_v63 = vld [vmem:[%s1066_s0 + $0x8] sm:$0xff]  ;;  %v18_v2 = vld [vmem:[%s1066_s0 + $0x18] sm:$0xff] }
  0x16   :  { %517 = vmatprep.subr.mxu1 %v77_v37  ;;  %483 = vmatpush3.msra.mxu0 %v29_v38  ;;  %v71_v61 = vld [vmem:[%s1067_s1 + $0x180] sm:$0xff]  ;;  %v118_v3 = vld [vmem:[%s1067_s1 + $0x2f8] sm:$0xff]  ;;  %v17_v5 = vld [vmem:[%s1066_s0 + $0x10] sm:$0xff] }
  0x17   :  { %518 = vmatpush3.msra.mxu1 %v61_v39  ;;  %484 = vmatprep.subr.mxu0 %v44_v40  ;;  %v23_v62 = vld [vmem:[%s1067_s1] sm:$0xff]  ;;  %v150_v4 = vld [vmem:[%s1067_s1 + $0x3f8] sm:$0xff]  ;;  %v117_v8 = vld [vmem:[%s1067_s1 + $0x2f0] sm:$0xff] }
  0x18   :  { %519 = vmatprep.subr.mxu1 %v76_v41  ;;  %485 = vmatpush3.msra.mxu0 %v28_v42  ;;  %v55_v0 = vld [vmem:[%s1067_s1 + $0x100] sm:$0xff]  ;;  %v102_v6 = vld [vmem:[%s1067_s1 + $0x278] sm:$0xff]  ;;  %v149_v9 = vld [vmem:[%s1067_s1 + $0x3f0] sm:$0xff] }
  0x19   :  { %520 = vmatpush3.msra.mxu1 %v60_v43  ;;  %486 = vmatprep.subr.mxu0 %v43_v44  ;;  %v15_v1 = vld [vmem:[%s1066_s0] sm:$0xff]  ;;  %v134_v7 = vld [vmem:[%s1067_s1 + $0x378] sm:$0xff]  ;;  %v101_v10 = vld [vmem:[%s1067_s1 + $0x270] sm:$0xff] }
  0x1a   :  { %521 = vmatprep.subr.mxu1 %v75_v45  ;;  %487 = vmatpush3.msra.mxu0 %v27_v46  ;;  %v133_v11 = vld [vmem:[%s1067_s1 + $0x370] sm:$0xff]  ;;  %v116_v12 = vld [vmem:[%s1067_s1 + $0x2e8] sm:$0xff]  ;;  %v115_v16 = vld [vmem:[%s1067_s1 + $0x2e0] sm:$0xff] }
  0x1b   :  { %522 = vmatpush3.msra.mxu1 %v59_v47  ;;  %488 = vmatprep.subr.mxu0 %v42_v48  ;;  %v148_v13 = vld [vmem:[%s1067_s1 + $0x3e8] sm:$0xff]  ;;  %v147_v17 = vld [vmem:[%s1067_s1 + $0x3e0] sm:$0xff]  ;;  %v114_v20 = vld [vmem:[%s1067_s1 + $0x2d8] sm:$0xff] }
  0x1c   :  { %523 = vmatprep.subr.mxu1 %v74_v49  ;;  %489 = vmatpush3.msra.mxu0 %v26_v50  ;;  %v100_v14 = vld [vmem:[%s1067_s1 + $0x268] sm:$0xff]  ;;  %v99_v18 = vld [vmem:[%s1067_s1 + $0x260] sm:$0xff]  ;;  %v146_v21 = vld [vmem:[%s1067_s1 + $0x3d8] sm:$0xff] }
  0x1d   :  { %524 = vmatpush3.msra.mxu1 %v58_v51  ;;  %490 = vmatprep.subr.mxu0 %v41_v52  ;;  %v132_v15 = vld [vmem:[%s1067_s1 + $0x368] sm:$0xff]  ;;  %v131_v19 = vld [vmem:[%s1067_s1 + $0x360] sm:$0xff]  ;;  %v98_v22 = vld [vmem:[%s1067_s1 + $0x258] sm:$0xff] }
  0x1e   :  { %525 = vmatprep.subr.mxu1 %v73_v53  ;;  %491 = vmatpush3.msra.mxu0 %v25_v54  ;;  %v130_v23 = vld [vmem:[%s1067_s1 + $0x358] sm:$0xff]  ;;  %v113_v24 = vld [vmem:[%s1067_s1 + $0x2d0] sm:$0xff]  ;;  %v112_v28 = vld [vmem:[%s1067_s1 + $0x2c8] sm:$0xff] }
  0x1f   :  { %526 = vmatpush3.msra.mxu1 %v57_v55  ;;  %492 = vmatprep.subr.mxu0 %v40_v56  ;;  %v145_v25 = vld [vmem:[%s1067_s1 + $0x3d0] sm:$0xff]  ;;  %v144_v29 = vld [vmem:[%s1067_s1 + $0x3c8] sm:$0xff] }
  0x20   :  { %527 = vmatprep.subr.mxu1 %v72_v57  ;;  %493 = vmatpush3.msra.mxu0 %v24_v58  ;;  %v97_v26 = vld [vmem:[%s1067_s1 + $0x250] sm:$0xff]  ;;  %v96_v30 = vld [vmem:[%s1067_s1 + $0x248] sm:$0xff] }
  0x21   :  { %528 = vmatpush3.msra.mxu1 %v56_v59  ;;  %494 = vmatprep.subr.mxu0 %v39_v60  ;;  %v129_v27 = vld [vmem:[%s1067_s1 + $0x350] sm:$0xff]  ;;  %v128_v31 = vld [vmem:[%s1067_s1 + $0x348] sm:$0xff] }
  0x22   :  { %529 = vmatprep.subr.mxu1 %v71_v61  ;;  %495 = vmatpush3.msra.mxu0 %v23_v62 }
  0x23   :  { %222 = vmatprep.mubr.f32.mxu0 %v16_v63  ;;  %530 = vmatpush3.msra.mxu1 %v55_v0 }
  0x24   :  { %223 = vmatmul.mubr.f32.vlgmr.msra.gmra.mxu0 %v15_v1  ;;  %292 = vmatprep.mubr.f32.mxu1 %v18_v2 }
  0x25   :  { %534 = vmatprep.subr.mxu0 %v118_v3  ;;  %569 = vmatprep.subr.mxu1 %v150_v4 }
  0x26   :  { %293 = vmatmul.mubr.f32.vlgmr.msra.gmra.mxu1 %v17_v5  ;;  %535 = vmatpush3.msra.mxu0 %v102_v6 }
  0x27   :  { %570 = vmatpush3.msra.mxu1 %v134_v7  ;;  %536 = vmatprep.subr.mxu0 %v117_v8 }
  0x28   :  { %571 = vmatprep.subr.mxu1 %v149_v9  ;;  %537 = vmatpush3.msra.mxu0 %v101_v10 }
  0x29   :  { %572 = vmatpush3.msra.mxu1 %v133_v11  ;;  %538 = vmatprep.subr.mxu0 %v116_v12 }
  0x2a   :  { %573 = vmatprep.subr.mxu1 %v148_v13  ;;  %539 = vmatpush3.msra.mxu0 %v100_v14 }
  0x2b   :  { %574 = vmatpush3.msra.mxu1 %v132_v15  ;;  %540 = vmatprep.subr.mxu0 %v115_v16 }
  0x2c   :  { %575 = vmatprep.subr.mxu1 %v147_v17  ;;  %541 = vmatpush3.msra.mxu0 %v99_v18 }
  0x2d   :  { %576 = vmatpush3.msra.mxu1 %v131_v19  ;;  %542 = vmatprep.subr.mxu0 %v114_v20 }
  0x2e   :  { %577 = vmatprep.subr.mxu1 %v146_v21  ;;  %543 = vmatpush3.msra.mxu0 %v98_v22 }
  0x2f   :  { %578 = vmatpush3.msra.mxu1 %v130_v23  ;;  %544 = vmatprep.subr.mxu0 %v113_v24 }
  0x30   :  { %579 = vmatprep.subr.mxu1 %v145_v25 }
  0x31   :  { %8 = vsyncpa [#allocation3], 0  ;;  %545 = vmatpush3.msra.mxu0 %v97_v26  ;;  %580 = vmatpush3.msra.mxu1 %v129_v27  ;;  %v111_v32 = vld [vmem:[%s1067_s1 + $0x2c0] sm:$0xff]  ;;  %v110_v36 = vld [vmem:[%s1067_s1 + $0x2b8] sm:$0xff] }
  0x32   :  { %v143_v33 = vld [vmem:[%s1067_s1 + $0x3c0] sm:$0xff]  ;;  %546 = vmatprep.subr.mxu0 %v112_v28  ;;  %581 = vmatprep.subr.mxu1 %v144_v29  ;;  %v142_v37 = vld [vmem:[%s1067_s1 + $0x3b8] sm:$0xff]  ;;  %v109_v40 = vld [vmem:[%s1067_s1 + $0x2b0] sm:$0xff] }
  0x33   :  { %v95_v34 = vld [vmem:[%s1067_s1 + $0x240] sm:$0xff]  ;;  %547 = vmatpush3.msra.mxu0 %v96_v30  ;;  %582 = vmatpush3.msra.mxu1 %v128_v31  ;;  %v94_v38 = vld [vmem:[%s1067_s1 + $0x238] sm:$0xff]  ;;  %v141_v41 = vld [vmem:[%s1067_s1 + $0x3b0] sm:$0xff] }
  0x34   :  { %v127_v35 = vld [vmem:[%s1067_s1 + $0x340] sm:$0xff]  ;;  %548 = vmatprep.subr.mxu0 %v111_v32  ;;  %583 = vmatprep.subr.mxu1 %v143_v33  ;;  %v126_v39 = vld [vmem:[%s1067_s1 + $0x338] sm:$0xff]  ;;  %v93_v42 = vld [vmem:[%s1067_s1 + $0x230] sm:$0xff] }
  0x35   :  { %549 = vmatpush3.msra.mxu0 %v95_v34  ;;  %584 = vmatpush3.msra.mxu1 %v127_v35  ;;  %v125_v43 = vld [vmem:[%s1067_s1 + $0x330] sm:$0xff]  ;;  %v108_v44 = vld [vmem:[%s1067_s1 + $0x2a8] sm:$0xff]  ;;  %v107_v48 = vld [vmem:[%s1067_s1 + $0x2a0] sm:$0xff] }
  0x36   :  { %550 = vmatprep.subr.mxu0 %v110_v36  ;;  %585 = vmatprep.subr.mxu1 %v142_v37  ;;  %v140_v45 = vld [vmem:[%s1067_s1 + $0x3a8] sm:$0xff]  ;;  %v139_v49 = vld [vmem:[%s1067_s1 + $0x3a0] sm:$0xff]  ;;  %v106_v52 = vld [vmem:[%s1067_s1 + $0x298] sm:$0xff] }
  0x37   :  { %551 = vmatpush3.msra.mxu0 %v94_v38  ;;  %586 = vmatpush3.msra.mxu1 %v126_v39  ;;  %v92_v46 = vld [vmem:[%s1067_s1 + $0x228] sm:$0xff]  ;;  %v91_v50 = vld [vmem:[%s1067_s1 + $0x220] sm:$0xff]  ;;  %v138_v53 = vld [vmem:[%s1067_s1 + $0x398] sm:$0xff] }
  0x38   :  { %552 = vmatprep.subr.mxu0 %v109_v40  ;;  %587 = vmatprep.subr.mxu1 %v141_v41  ;;  %v124_v47 = vld [vmem:[%s1067_s1 + $0x328] sm:$0xff]  ;;  %v123_v51 = vld [vmem:[%s1067_s1 + $0x320] sm:$0xff]  ;;  %v90_v54 = vld [vmem:[%s1067_s1 + $0x218] sm:$0xff] }
  0x39   :  { %553 = vmatpush3.msra.mxu0 %v93_v42  ;;  %588 = vmatpush3.msra.mxu1 %v125_v43  ;;  %v122_v55 = vld [vmem:[%s1067_s1 + $0x318] sm:$0xff]  ;;  %v105_v56 = vld [vmem:[%s1067_s1 + $0x290] sm:$0xff]  ;;  %v104_v60 = vld [vmem:[%s1067_s1 + $0x288] sm:$0xff] }
  0x3a   :  { %554 = vmatprep.subr.mxu0 %v108_v44  ;;  %589 = vmatprep.subr.mxu1 %v140_v45  ;;  %v137_v57 = vld [vmem:[%s1067_s1 + $0x390] sm:$0xff]  ;;  %v136_v61 = vld [vmem:[%s1067_s1 + $0x388] sm:$0xff]  ;;  %v103_v0 = vld [vmem:[%s1067_s1 + $0x280] sm:$0xff] }
  0x3b   :  { %555 = vmatpush3.msra.mxu0 %v92_v46  ;;  %590 = vmatpush3.msra.mxu1 %v124_v47  ;;  %v89_v58 = vld [vmem:[%s1067_s1 + $0x210] sm:$0xff]  ;;  %v88_v62 = vld [vmem:[%s1067_s1 + $0x208] sm:$0xff]  ;;  %v135_v1 = vld [vmem:[%s1067_s1 + $0x380] sm:$0xff] }
  0x3c   :  { %556 = vmatprep.subr.mxu0 %v107_v48  ;;  %591 = vmatprep.subr.mxu1 %v139_v49  ;;  %v121_v59 = vld [vmem:[%s1067_s1 + $0x310] sm:$0xff]  ;;  %v120_v63 = vld [vmem:[%s1067_s1 + $0x308] sm:$0xff]  ;;  %v87_v2 = vld [vmem:[%s1067_s1 + $0x200] sm:$0xff] }
  0x3d   :  { %557 = vmatpush3.msra.mxu0 %v91_v50  ;;  %592 = vmatpush3.msra.mxu1 %v123_v51  ;;  %v20_v3 = vld [vmem:[%s1066_s0 + $0x28] sm:$0xff]  ;;  %v119_v4 = vld [vmem:[%s1067_s1 + $0x300] sm:$0xff]  ;;  %v22_v5 = vld [vmem:[%s1066_s0 + $0x38] sm:$0xff] }
  0x3e   :  { %558 = vmatprep.subr.mxu0 %v106_v52  ;;  %593 = vmatprep.subr.mxu1 %v138_v53  ;;  %v19_v6 = vld [vmem:[%s1066_s0 + $0x20] sm:$0xff]  ;;  %v21_v7 = vld [vmem:[%s1066_s0 + $0x30] sm:$0xff]  ;;  %s631_s0 = smov [#allocation2]  }
  0x3f   :  { %559 = vmatpush3.msra.mxu0 %v90_v54  ;;  %594 = vmatpush3.msra.mxu1 %v122_v55  ;;  %v463_v12 = vld [vmem:[%s1068_s2] ss:$0 sm:$0xff]  ;;  %s455_s2 = sshll.u32 %s631_s0, 4  ;;  %s456_s2 = int_to_ptr.vmem [resolvable:$true] %s455_s2 }
  0x40   :  { %560 = vmatprep.subr.mxu0 %v105_v56  ;;  %595 = vmatprep.subr.mxu1 %v137_v57  ;;  %s609_s15 = scalar_lea.vmem %s456_s2, 128  ;;  %p614_p1 = scmp.lt.s32.totalorder %s456_s2, %s456_s2 }
  0x41   :  { %561 = vmatpush3.msra.mxu0 %v89_v58  ;;  %596 = vmatpush3.msra.mxu1 %v121_v59  ;;  %p610_p0 = scmp.ne.s32.totalorder %s456_s2, %s609_s15  ;;  %p615_p2 = scmp.lt.s32.totalorder %s609_s15, %s609_s15 }
  0x42   :  { %562 = vmatprep.subr.mxu0 %v104_v60  ;;  %597 = vmatprep.subr.mxu1 %v136_v61 }
  0x43   :  { %563 = vmatpush3.msra.mxu0 %v88_v62  ;;  %598 = vmatpush3.msra.mxu1 %v120_v63  ;;  %p616_p3 = por %p615_p2, %p614_p1 }
  0x44   :  { %564 = vmatprep.subr.mxu0 %v103_v0  ;;  %599 = vmatprep.subr.mxu1 %v135_v1 }
  0x45   :  { %565 = vmatpush3.msra.mxu0 %v87_v2  ;;  %362 = vmatprep.mubr.f32.mxu0 %v20_v3  ;;  %p617_p4 = pnand %p616_p3, %p610_p0 }
  0x46   :  { %600 = vmatpush3.msra.mxu1 %v119_v4  ;;  %432 = vmatprep.mubr.f32.mxu1 %v22_v5 }
  0x47   :  { %363 = vmatmul.mubr.f32.vlgmr.msra.gmra.mxu0 %v19_v6  ;;  %433 = vmatmul.mubr.f32.vlgmr.msra.gmra.mxu1 %v21_v7 }
  0xe4   :  { %v496_v8 = vpop.f32.mrf.mxu0 }
  0xe6   :  { %v531_v9 = vpop.f32.mrf.mxu1  ;;  %v497_v10 = vpop.f32.mrf.mxu0 }
  0xe7   :  { %v498_v11 = vadd.f32 %v497_v10, %v496_v8 }
  0xe8   :  { %v532_v13 = vpop.f32.mrf.mxu1 }
  0xe9   :  { %v225_v14 = vadd.f32 %v498_v11, %v463_v12  ;;  %v533_v15 = vadd.f32 %v532_v13, %v531_v9 }
  0xeb   :  { %v295_v20 = vadd.f32 %v533_v15, %v225_v14 }
 0x107   :  { %v566_v16 = vpop.f32.mrf.mxu0  ;;  %v601_v17 = vpop.f32.mrf.mxu1 }
 0x109   :  { %v567_v18 = vpop.f32.mrf.mxu0  ;;  %v602_v19 = vpop.f32.mrf.mxu1 }
 0x10a   :  { %v568_v21 = vadd.f32 %v567_v18, %v566_v16  ;;  %v603_v23 = vadd.f32 %v602_v19, %v601_v17 }
 0x10c   :  { %v365_v22 = vadd.f32 %v568_v21, %v295_v20 }
 0x10e   :  { %v435_v24 = vadd.f32 %v603_v23, %v365_v22 }
 0x110   :  { %438 = vmax.xlane.f32.xlu0 %v435_v24 }
 0x199   :  { %v439_v25 = vpop.xlane.xlu0 %438 }
 0x19a   :  { %v440_v26 = vsub.f32 %v435_v24, %v439_v25 }
 0x19c   :  { %v441_v27 = vmul.f32 1.442695, %v440_v26 }
 0x19e   :  { %605 = vpow2.f32 %v441_v27 }
 0x1ab   :  { %v606_v28 = vpop.eup %605 }
 0x1ac   :  { %443 = vadd.xlane.f32.xlu0 %v606_v28 }
 0x235   :  { %v444_v29 = vpop.xlane.xlu0 %443 }
 0x236   :  { %607 = vlog2.f32 %v444_v29 }
 0x243   :  { %v608_v30 = vpop.eup %607 }
 0x244   :  { %v446_v31 = vmul.f32 0.6931472, %v608_v30 }
 0x246   :  { %v447_v32 = vsub.f32 %v440_v26, %v446_v31 }
 0x248   :  { %448 = vst [vmem:[#allocation2] sm:$0xff] %v447_v32 }
 0x249   :  { %620 = shalt.err (!%p617_p4)
}
 0x24a   :  { %458 = dma.vmem_to_hbm [thread:$0]  %s456_s2, 128, %s1069_s3, [#allocation3]  }
 0x24b   :  { %629 = dma.done.wait [#allocation3], 128  }
 0x24c   :  { %630 = vsyncadd [#allocation3], 4294967168 }
 0x24d   :  { %462 = vsyncpa [#allocation3], 1 }

</bundles_post_ra>
